<compile_context>
chip_gen: v5e
topology: v5e:2x2
jax: 0.10.0
libtpu: 0.0.40
codegen_flags: <defaults>
</compile_context>

<pallas_src>
import functools

import jax
import jax.numpy as jnp
from jax.experimental import pallas as pl
from jax.experimental.pallas import tpu as pltpu

WEIGHT_CE = 0.8
SMOOTH = 1e-5
_LANES = 128


def _cdiv(a, b):
    return -(-a // b)


def _round_up(a, b):
    return _cdiv(a, b) * b


def _num_tensorcores():
    """Best-effort TensorCore count; falls back to 1 (single-TC behaviour)."""
    try:
        info = pltpu.get_tpu_info()
    except Exception:
        return 1
    for name in ("num_cores", "core_count", "num_tensorcores", "cores_per_chip"):
        v = getattr(info, name, None)
        if v is None:
            continue
        try:
            v = int(v)
        except Exception:
            continue
        if v >= 1:
            return v
    return 1


def _dice_ce_kernel(x_ref, t_ref, out_ref, acc_ce, acc_inter, acc_denom, *, one_hot):
    """Processes one (C, t_rows, 128) tile for one (sample, part) slice.

    out_ref: (1, 1, 128) partials; lanes 0..2 = [sum_ce, sum(x*t), sum(x)+sum(t)].
    """
    j = pl.program_id(1)

    @pl.when(j == 0)
    def _init():
        acc_ce[...] = jnp.zeros_like(acc_ce)
        acc_inter[...] = jnp.zeros_like(acc_inter)
        acc_denom[...] = jnp.zeros_like(acc_denom)

    x = x_ref[...].astype(jnp.float32)   # (C, t_rows, 128) logits
    t = t_ref[...].astype(jnp.float32)   # (C, t_rows, 128) targets
    c = x.shape[0]

    # Per-pixel logsumexp over classes: reductions over the leading C dim are
    # pure elementwise VPU ops (no sublane XLU work) in this layout.
    x_max = jnp.max(x, axis=0)                                         # (R, 128)
    lse = jnp.log(jnp.sum(jnp.exp(x - x_max[None]), axis=0)) + x_max   # (R, 128)

    xt = x * t
    if one_hot:
        # One-hot targets: logit at the target class == sum(x*t, C), which we
        # need for dice anyway.
        x_sel = jnp.sum(xt, axis=0)
    else:
        # Soft targets: first-occurrence argmax over C (matches torch.argmax).
        cls = jax.lax.broadcasted_iota(jnp.int32, x.shape, 0)
        t_max = jnp.max(t, axis=0, keepdims=True)
        idx = jnp.min(jnp.where(t == t_max, cls, c), axis=0, keepdims=True)
        x_sel = jnp.sum(jnp.where(cls == idx, x, 0.0), axis=0)

    # Accumulate class-reduced vector partials in VMEM (no per-step cross-lane
    # reduce, no scalar read-modify-write chain).
    acc_ce[...] += lse - x_sel
    acc_inter[...] += jnp.sum(xt, axis=0)
    acc_denom[...] += jnp.sum(x + t, axis=0)

    @pl.when(j == pl.num_programs(1) - 1)
    def _finalize():
        ce_s = jnp.sum(acc_ce[...])
        in_s = jnp.sum(acc_inter[...])
        dn_s = jnp.sum(acc_denom[...])
        lane = jax.lax.broadcasted_iota(jnp.int32, (1, _LANES), 1)
        vec = jnp.where(lane == 0, ce_s,
                        jnp.where(lane == 1, in_s,
                                  jnp.where(lane == 2, dn_s, 0.0)))
        out_ref[0] = vec


def _choose_tile_rows(hw_rows, parts, cap_rows):
    """Pick a sublane-row tile size (multiple of 8, <= cap) minimizing padding
    within [cap/2, cap], preferring larger tiles."""
    t0 = max(8, min(cap_rows, _round_up(_cdiv(hw_rows, parts), 8)))
    t0 = (t0 // 8) * 8
    best_t = t0
    best_pad = (-hw_rows) % (parts * t0)
    t = t0 - 8
    lo = max(8, t0 // 2)
    while t >= lo and best_pad > 0:
        pad = (-hw_rows) % (parts * t)
        if pad < best_pad:
            best_t, best_pad = t, pad
        t -= 8
    return best_t


def dice_ce_loss(net_output, target, *, weight_ce=WEIGHT_CE, smooth=SMOOTH,
                 one_hot_targets=True, max_tile_bytes=4 << 20):
    """net_output, target: (N, C, H, W) arrays (NCHW, like PyTorch).

    Inputs may be f32 or bf16; the kernel computes in f32 after the load-cast.
    Set one_hot_targets=False for soft targets (keeps torch.argmax semantics).
    """
    n, c, h, w = net_output.shape
    assert target.shape == net_output.shape
    hw = h * w
    hw_rows = _cdiv(hw, _LANES)

    # Extra parallel split of the pixel range only where it buys TC parallelism.
    num_tc = _num_tensorcores()
    parts = 2 if (num_tc >= 2 and n % 2 == 1 and hw_rows >= 16) else 1

    x_item = jnp.dtype(net_output.dtype).itemsize
    t_item = jnp.dtype(target.dtype).itemsize
    cap_rows = max(8, (max_tile_bytes // (c * _LANES * max(x_item, t_item))) // 8 * 8)

    if parts == 1 and hw_rows <= cap_rows:
        t_rows = hw_rows          # block == full dim -> always legal
        k_inner = 1
        rows = hw_rows
    else:
        t_rows = _choose_tile_rows(hw_rows, parts, cap_rows)
        rows = _round_up(hw_rows, parts * t_rows)
        k_inner = rows // (parts * t_rows)

    hw_padded = rows * _LANES
    pad = hw_padded - hw

    # NCHW -> (N, C, H*W): contiguous reshape; pad pixel axis once if needed.
    x3 = net_output.reshape(n, c, hw)
    t3 = target.reshape(n, c, hw)
    if pad:
        x3 = jnp.pad(x3, ((0, 0), (0, 0), (0, pad)))
        t3 = jnp.pad(t3, ((0, 0), (0, 0), (0, pad)))
    x4 = x3.reshape(n, c, rows, _LANES)
    t4 = t3.reshape(n, c, rows, _LANES)

    n_slices = n * parts

    if parts == 1:
        def in_index_map(g, j):
            return (g, 0, j, 0)
    else:
        def in_index_map(g, j):
            return (g // parts, 0, (g % parts) * k_inner + j, 0)

    x_bytes = n * c * hw_padded * x_item
    t_bytes = n * c * hw_padded * t_item
    tile_bytes = c * t_rows * _LANES * (x_item + t_item)
    scratch_bytes = 3 * t_rows * _LANES * 4
    vmem_needed = 2 * tile_bytes + scratch_bytes + (1 << 16)   # 2 = double-buffer
    vmem_limit = min(128 << 20, max(32 << 20, (vmem_needed * 3) // 2))

    kernel = functools.partial(_dice_ce_kernel, one_hot=one_hot_targets)

    partials = pl.pallas_call(
        kernel,
        out_shape=jax.ShapeDtypeStruct((n_slices, 1, _LANES), jnp.float32),
        grid_spec=pltpu.PrefetchScalarGridSpec(
            num_scalar_prefetch=0,
            grid=(n_slices, k_inner),
            in_specs=[
                pl.BlockSpec((None, c, t_rows, _LANES), in_index_map),
                pl.BlockSpec((None, c, t_rows, _LANES), in_index_map),
            ],
            out_specs=pl.BlockSpec((1, 1, _LANES), lambda g, j: (g, 0, 0)),
            scratch_shapes=[
                pltpu.VMEM((t_rows, _LANES), jnp.float32),   # CE partial sums
                pltpu.VMEM((t_rows, _LANES), jnp.float32),   # x*t partial sums
                pltpu.VMEM((t_rows, _LANES), jnp.float32),   # x+t partial sums
            ],
        ),
        compiler_params=pltpu.CompilerParams(
            dimension_semantics=("parallel", "arbitrary"),
            vmem_limit_bytes=int(vmem_limit),
        ),
        cost_estimate=pl.CostEstimate(
            flops=10 * n * c * hw_padded,
            transcendentals=n * hw_padded * (c + 1),
            bytes_accessed=x_bytes + t_bytes + n_slices * _LANES * 4,
        ),
    )(x4, t4)

    # Tiny scalar combine of per-slice partials (also the megacore merge).
    partials = partials[:, 0, :]
    ce_sum = jnp.sum(partials[:, 0])
    inter = jnp.sum(partials[:, 1])
    denom = jnp.sum(partials[:, 2])

    # Padded pixels (zero logits, zero targets) add exactly log(C) each to the
    # CE sum and nothing to the dice sums; subtract the static count.
    ce_sum = ce_sum - jnp.float32(n * pad) * jnp.log(jnp.float32(c))
    ce = ce_sum / jnp.float32(n * hw)
    dice = 1.0 - (2.0 * inter + smooth) / (denom + smooth)
    return weight_ce * ce + (1.0 - weight_ce) * dice


def _reference(net_output, target, weight_ce=WEIGHT_CE, smooth=SMOOTH):
    """Pure-JAX reference mirroring the PyTorch module."""
    y_pd = net_output.reshape(-1)
    y_gt = target.reshape(-1)
    inter = jnp.sum(y_pd * y_gt)
    dice = 1.0 - (2.0 * inter + smooth) / (jnp.sum(y_pd) + jnp.sum(y_gt) + smooth)

    mask = jnp.argmax(target, axis=1)                 # (N, H, W)
    logits = jnp.moveaxis(net_output, 1, -1)          # (N, H, W, C)
    lse = jax.scipy.special.logsumexp(logits, axis=-1)
    sel = jnp.take_along_axis(logits, mask[..., None], axis=-1)[..., 0]
    ce = jnp.mean(lse - sel)
    return weight_ce * ce + (1.0 - weight_ce) * dice


if __name__ == "__main__":
    key = jax.random.PRNGKey(0)
    k1, k2, k3, k4 = jax.random.split(key, 4)

    # Test 1: small power-of-two shape (no padding path).
    N, C, H, W = 2, 4, 16, 16
    net_output = jax.random.normal(k1, (N, C, H, W), dtype=jnp.float32)
    labels = jax.random.randint(k2, (N, H, W), 0, C)
    target = jax.nn.one_hot(labels, C, dtype=jnp.float32)   # (N, H, W, C)
    target = jnp.transpose(target, (0, 3, 1, 2))             # -> (N, C, H, W)

    loss = jax.block_until_ready(dice_ce_loss(net_output, target))
    ref = _reference(net_output, target)
    assert jnp.allclose(loss, ref, atol=1e-5, rtol=1e-5), (loss, ref)

    # Test 2: H*W not a multiple of 128 (exercises pad + static CE correction).
    N2, C2, H2, W2 = 1, 5, 10, 30
    x2 = jax.random.normal(k3, (N2, C2, H2, W2), dtype=jnp.float32)
    lab2 = jax.random.randint(k4, (N2, H2, W2), 0, C2)
    tgt2 = jnp.transpose(jax.nn.one_hot(lab2, C2, dtype=jnp.float32), (0, 3, 1, 2))
    loss2 = jax.block_until_ready(dice_ce_loss(x2, tgt2))
    ref2 = _reference(x2, tgt2)
    assert jnp.allclose(loss2, ref2, atol=2e-5, rtol=1e-5), (loss2, ref2)

    print("KERNEL_OK")
</pallas_src>

<mosaic_0001>
module attributes {stable_mosaic.version = 11 : i64} {
  func.func @_dice_ce_kernel(%arg0: i32, %arg1: i32, %arg2: memref<1x4x2x128xf32, #tpu.memory_space<vmem>>, %arg3: memref<1x4x2x128xf32, #tpu.memory_space<vmem>>, %arg4: memref<1x1x128xf32, #tpu.memory_space<vmem>>, %arg5: memref<2x128xf32, #tpu.memory_space<vmem>>, %arg6: memref<2x128xf32, #tpu.memory_space<vmem>>, %arg7: memref<2x128xf32, #tpu.memory_space<vmem>>) attributes {dimension_semantics = [#tpu.dimension_semantics<parallel>, #tpu.dimension_semantics<arbitrary>], iteration_bounds = array<i64: 2, 1>, scalar_prefetch = 0 : i64, scratch_operands = 3 : i64, tpu.core_type = #tpu.core_type<tc>, window_params = [{transform_indices = @transform_0, window_bounds = array<i64: 1, 4, 2, 128>}, {transform_indices = @transform_1, window_bounds = array<i64: 1, 4, 2, 128>}, {transform_indices = @transform_2, window_bounds = array<i64: 1, 1, 128>}]} {
    %c0_i32 = arith.constant 0 : i32
    %0 = arith.cmpi eq, %arg1, %c0_i32 : i32
    %1 = arith.extui %0 : i1 to i32
    %c0_i32_0 = arith.constant 0 : i32
    %2 = arith.cmpi ne, %1, %c0_i32_0 : i32
    scf.if %2 {
      %cst_26 = arith.constant 0.000000e+00 : f32
      %33 = vector.broadcast %cst_26 : f32 to vector<2x128xf32>
      %c0_27 = arith.constant 0 : index
      %c0_28 = arith.constant 0 : index
      %34 = vector.load %arg5[%c0_27, %c0_28] : memref<2x128xf32, #tpu.memory_space<vmem>>, vector<2x128xf32>
      tpu.vector_store %arg5[%c0_27, %c0_28], %33 {strides = array<i32>} : memref<2x128xf32, #tpu.memory_space<vmem>>, vector<2x128xf32>,
      %cst_29 = arith.constant 0.000000e+00 : f32
      %35 = vector.broadcast %cst_29 : f32 to vector<2x128xf32>
      %c0_30 = arith.constant 0 : index
      %c0_31 = arith.constant 0 : index
      %36 = vector.load %arg6[%c0_30, %c0_31] : memref<2x128xf32, #tpu.memory_space<vmem>>, vector<2x128xf32>
      tpu.vector_store %arg6[%c0_30, %c0_31], %35 {strides = array<i32>} : memref<2x128xf32, #tpu.memory_space<vmem>>, vector<2x128xf32>,
      %cst_32 = arith.constant 0.000000e+00 : f32
      %37 = vector.broadcast %cst_32 : f32 to vector<2x128xf32>
      %c0_33 = arith.constant 0 : index
      %c0_34 = arith.constant 0 : index
      %38 = vector.load %arg7[%c0_33, %c0_34] : memref<2x128xf32, #tpu.memory_space<vmem>>, vector<2x128xf32>
      tpu.vector_store %arg7[%c0_33, %c0_34], %37 {strides = array<i32>} : memref<2x128xf32, #tpu.memory_space<vmem>>, vector<2x128xf32>,
    } else {
    }
    %c0 = arith.constant 0 : index
    %c0_1 = arith.constant 0 : index
    %c0_2 = arith.constant 0 : index
    %c0_3 = arith.constant 0 : index
    %3 = vector.load %arg2[%c0, %c0_1, %c0_2, %c0_3] : memref<1x4x2x128xf32, #tpu.memory_space<vmem>>, vector<1x4x2x128xf32>
    %4 = vector.shape_cast %3 : vector<1x4x2x128xf32> to vector<4x2x128xf32>
    %c0_4 = arith.constant 0 : index
    %c0_5 = arith.constant 0 : index
    %c0_6 = arith.constant 0 : index
    %c0_7 = arith.constant 0 : index
    %5 = vector.load %arg3[%c0_4, %c0_5, %c0_6, %c0_7] : memref<1x4x2x128xf32, #tpu.memory_space<vmem>>, vector<1x4x2x128xf32>
    %6 = vector.shape_cast %5 : vector<1x4x2x128xf32> to vector<4x2x128xf32>
    %cst = arith.constant dense<0xFF800000> : vector<2x128xf32>
    %7 = vector.multi_reduction <maximumf>, %4, %cst [0] : vector<4x2x128xf32> to vector<2x128xf32>
    %8 = vector.shape_cast %7 : vector<2x128xf32> to vector<1x2x128xf32>
    %9 = vector.broadcast %8 : vector<1x2x128xf32> to vector<4x2x128xf32>
    %10 = arith.subf %4, %9 : vector<4x2x128xf32>
    %11 = math.exp %10 : vector<4x2x128xf32>
    %cst_8 = arith.constant dense<0.000000e+00> : vector<2x128xf32>
    %12 = vector.multi_reduction <add>, %11, %cst_8 [0] : vector<4x2x128xf32> to vector<2x128xf32>
    %13 = math.log %12 : vector<2x128xf32>
    %14 = arith.addf %13, %7 : vector<2x128xf32>
    %15 = arith.mulf %4, %6 : vector<4x2x128xf32>
    %cst_9 = arith.constant dense<0.000000e+00> : vector<2x128xf32>
    %16 = vector.multi_reduction <add>, %15, %cst_9 [0] : vector<4x2x128xf32> to vector<2x128xf32>
    %c0_10 = arith.constant 0 : index
    %c0_11 = arith.constant 0 : index
    %17 = vector.load %arg5[%c0_10, %c0_11] : memref<2x128xf32, #tpu.memory_space<vmem>>, vector<2x128xf32>
    %18 = arith.subf %14, %16 : vector<2x128xf32>
    %19 = arith.addf %17, %18 : vector<2x128xf32>
    %c0_12 = arith.constant 0 : index
    %c0_13 = arith.constant 0 : index
    %20 = vector.load %arg5[%c0_12, %c0_13] : memref<2x128xf32, #tpu.memory_space<vmem>>, vector<2x128xf32>
    tpu.vector_store %arg5[%c0_12, %c0_13], %19 {strides = array<i32>} : memref<2x128xf32, #tpu.memory_space<vmem>>, vector<2x128xf32>,
    %c0_14 = arith.constant 0 : index
    %c0_15 = arith.constant 0 : index
    %21 = vector.load %arg6[%c0_14, %c0_15] : memref<2x128xf32, #tpu.memory_space<vmem>>, vector<2x128xf32>
    %cst_16 = arith.constant dense<0.000000e+00> : vector<2x128xf32>
    %22 = vector.multi_reduction <add>, %15, %cst_16 [0] : vector<4x2x128xf32> to vector<2x128xf32>
    %23 = arith.addf %21, %22 : vector<2x128xf32>
    %c0_17 = arith.constant 0 : index
    %c0_18 = arith.constant 0 : index
    %24 = vector.load %arg6[%c0_17, %c0_18] : memref<2x128xf32, #tpu.memory_space<vmem>>, vector<2x128xf32>
    tpu.vector_store %arg6[%c0_17, %c0_18], %23 {strides = array<i32>} : memref<2x128xf32, #tpu.memory_space<vmem>>, vector<2x128xf32>,
    %c0_19 = arith.constant 0 : index
    %c0_20 = arith.constant 0 : index
    %25 = vector.load %arg7[%c0_19, %c0_20] : memref<2x128xf32, #tpu.memory_space<vmem>>, vector<2x128xf32>
    %26 = arith.addf %4, %6 : vector<4x2x128xf32>
    %cst_21 = arith.constant dense<0.000000e+00> : vector<2x128xf32>
    %27 = vector.multi_reduction <add>, %26, %cst_21 [0] : vector<4x2x128xf32> to vector<2x128xf32>
    %28 = arith.addf %25, %27 : vector<2x128xf32>
    %c0_22 = arith.constant 0 : index
    %c0_23 = arith.constant 0 : index
    %29 = vector.load %arg7[%c0_22, %c0_23] : memref<2x128xf32, #tpu.memory_space<vmem>>, vector<2x128xf32>
    tpu.vector_store %arg7[%c0_22, %c0_23], %28 {strides = array<i32>} : memref<2x128xf32, #tpu.memory_space<vmem>>, vector<2x128xf32>,
    %c0_i32_24 = arith.constant 0 : i32
    %30 = arith.cmpi eq, %arg1, %c0_i32_24 : i32
    %31 = arith.extui %30 : i1 to i32
    %c0_i32_25 = arith.constant 0 : i32
    %32 = arith.cmpi ne, %31, %c0_i32_25 : i32
    scf.if %32 {
      %c0_26 = arith.constant 0 : index
      %c0_27 = arith.constant 0 : index
      %33 = vector.load %arg5[%c0_26, %c0_27] : memref<2x128xf32, #tpu.memory_space<vmem>>, vector<2x128xf32>
      %34 = vector.shape_cast %33 : vector<2x128xf32> to vector<1x2x128xf32>
      %cst_28 = arith.constant dense<0.000000e+00> : vector<1xf32>
      %35 = vector.multi_reduction <add>, %34, %cst_28 [1, 2] : vector<1x2x128xf32> to vector<1xf32>
      %36 = vector.shape_cast %35 : vector<1xf32> to vector<1x1x1xf32>
      %37 = vector.extract %36[0, 0, 0] : f32 from vector<1x1x1xf32>
      %c0_29 = arith.constant 0 : index
      %c0_30 = arith.constant 0 : index
      %38 = vector.load %arg6[%c0_29, %c0_30] : memref<2x128xf32, #tpu.memory_space<vmem>>, vector<2x128xf32>
      %39 = vector.shape_cast %38 : vector<2x128xf32> to vector<1x2x128xf32>
      %cst_31 = arith.constant dense<0.000000e+00> : vector<1xf32>
      %40 = vector.multi_reduction <add>, %39, %cst_31 [1, 2] : vector<1x2x128xf32> to vector<1xf32>
      %41 = vector.shape_cast %40 : vector<1xf32> to vector<1x1x1xf32>
      %42 = vector.extract %41[0, 0, 0] : f32 from vector<1x1x1xf32>
      %c0_32 = arith.constant 0 : index
      %c0_33 = arith.constant 0 : index
      %43 = vector.load %arg7[%c0_32, %c0_33] : memref<2x128xf32, #tpu.memory_space<vmem>>, vector<2x128xf32>
      %44 = vector.shape_cast %43 : vector<2x128xf32> to vector<1x2x128xf32>
      %cst_34 = arith.constant dense<0.000000e+00> : vector<1xf32>
      %45 = vector.multi_reduction <add>, %44, %cst_34 [1, 2] : vector<1x2x128xf32> to vector<1xf32>
      %46 = vector.shape_cast %45 : vector<1xf32> to vector<1x1x1xf32>
      %47 = vector.extract %46[0, 0, 0] : f32 from vector<1x1x1xf32>
      %48 = tpu.iota {dimensions = array<i32: 1>} : vector<1x128xi32>
      %c0_i32_35 = arith.constant 0 : i32
      %49 = vector.broadcast %c0_i32_35 : i32 to vector<1x128xi32>
      %50 = arith.cmpi eq, %48, %49 : vector<1x128xi32>
      %c1_i32 = arith.constant 1 : i32
      %51 = vector.broadcast %c1_i32 : i32 to vector<1x128xi32>
      %52 = arith.cmpi eq, %48, %51 : vector<1x128xi32>
      %c2_i32 = arith.constant 2 : i32
      %53 = vector.broadcast %c2_i32 : i32 to vector<1x128xi32>
      %54 = arith.cmpi eq, %48, %53 : vector<1x128xi32>
      %cst_36 = arith.constant 0.000000e+00 : f32
      %55 = vector.broadcast %47 : f32 to vector<1x128xf32>
      %56 = vector.broadcast %cst_36 : f32 to vector<1x128xf32>
      %57 = arith.select %54, %55, %56 : vector<1x128xi1>, vector<1x128xf32>
      %58 = vector.broadcast %42 : f32 to vector<1x128xf32>
      %59 = arith.select %52, %58, %57 : vector<1x128xi1>, vector<1x128xf32>
      %60 = vector.broadcast %37 : f32 to vector<1x128xf32>
      %61 = arith.select %50, %60, %59 : vector<1x128xi1>, vector<1x128xf32>
      %c0_37 = arith.constant 0 : index
      %c0_38 = arith.constant 0 : index
      %c0_39 = arith.constant 0 : index
      %62 = vector.load %arg4[%c0_37, %c0_38, %c0_39] : memref<1x1x128xf32, #tpu.memory_space<vmem>>, vector<1x1x128xf32>
      %63 = vector.shape_cast %62 : vector<1x1x128xf32> to vector<1x128xf32>
      %64 = vector.shape_cast %61 : vector<1x128xf32> to vector<1x1x128xf32>
      tpu.vector_store %arg4[%c0_37, %c0_38, %c0_39], %64 {strides = array<i32>} : memref<1x1x128xf32, #tpu.memory_space<vmem>>, vector<1x1x128xf32>,
    } else {
    }
    return
  }
  func.func @transform_0(%arg0: i32, %arg1: i32) -> (i32, i32, i32, i32) {
    %c0_i32 = arith.constant 0 : i32
    %c0_i32_0 = arith.constant 0 : i32
    %c0_i32_1 = arith.constant 0 : i32
    return %arg0, %c0_i32, %arg1, %c0_i32_0 : i32, i32, i32, i32
  }
  func.func @transform_1(%arg0: i32, %arg1: i32) -> (i32, i32, i32, i32) {
    %c0_i32 = arith.constant 0 : i32
    %c0_i32_0 = arith.constant 0 : i32
    %c0_i32_1 = arith.constant 0 : i32
    return %arg0, %c0_i32, %arg1, %c0_i32_0 : i32, i32, i32, i32
  }
  func.func @transform_2(%arg0: i32, %arg1: i32) -> (i32, i32, i32) {
    %c0_i32 = arith.constant 0 : i32
    %c0_i32_0 = arith.constant 0 : i32
    %c0_i32_1 = arith.constant 0 : i32
    return %arg0, %c0_i32, %c0_i32_0 : i32, i32, i32
  }
}

</mosaic_0001>

<bundles_post_ra>
// kernel: tpu_custom_call.1
= control target key start
LH: loop header
LB: loop body
LE: loop exit
PB: predicated region body
PF: predicated region fallthrough
CT: control target
= control target key end

     0   :  { %7 = vsyncpa [#allocation6], 0  ;;  %s895_s0 = inlined_call_operand.hbm [shape: f32[2,4,2,128], index: 0, kind: input, shape index: {}]   ;;  %s896_s1 = inlined_call_operand.hbm [shape: f32[2,4,2,128], index: 1, kind: input, shape index: {}]   ;;  %s897_s2 = inlined_call_operand.hbm [shape: f32[2,1,128], index: 2, kind: output, shape index: {}]  }
   0x1   :  { %9 = vsyncpa [#allocation6 + $0x1], 0 }
   0x2   :  { %10 = vsyncpa [#allocation9], 0 }
   0x3   :  { %12 = vsyncpa [#allocation9 + $0x1], 0 }
   0x4   :  { %13 = vsyncpa [#allocation7], 0 }
   0x5   :  { %15 = vsyncpa [#allocation7 + $0x1], 0  ;;  %s731_s9 = smov 0   ;;  %s733_s10 = smov 0  }
   0x6   :  { %s735_s11 = smov 0   ;;  %s737_s12 = smov 0  }
   0x7   :  { %s739_s13 = smov 0   ;;  %s741_s14 = smov 0  }
   0x8 LB: > { %s462_s15 = sadd.s32 4294967295, %s711_s14   ;;  %s463_s16 = sadd.s32 4294967294, %s711_s14   ;;  %s711_s14 = sphi %s741_s14, %s21_s14   ;;  %s707_s13 = sphi %s739_s13, %s907_s13   ;;  %s703_s12 = sphi %s737_s12, %s906_s12   ;;  %s699_s11 = sphi %s735_s11, %s905_s11   ;;  %s695_s10 = sphi %s733_s10, %s904_s10   ;;  %s691_s9 = sphi %s731_s9, %s903_s9  }
   0x9   : > { %s33_s17 = sadd.s32 1, %s707_s13  ;;  %s42_s18 = sadd.s32 1, %s699_s11 }
   0xa   : > { %p35_p0 = scmp.ge.s32.totalorder %s33_s17, 2  ;;  %p49_p1 = scmp.ne.s32.totalorder %s699_s11, %s695_s10 }
   0xb   : > { %p50_p2 = scmp.eq.s32.totalorder %s711_s14, 0  ;;  %p55_p3 = scmp.ne.s32.totalorder %s695_s10, %s691_s9 }
   0xc   : > { %s909_s17 = smov (%p35_p0, %s33_s17), 0  ;;  %p56_p5 = scmp.eq.s32.totalorder %s462_s15, 0 }
   0xd   : > { %p772_p4 = por %p50_p2, %p49_p1  ;;  %s37_s20 = ssub.s32 %s707_s13, %s909_s17 }
   0xe   : > { %p107_p6 = scmp.eq.s32.totalorder %s462_s15, 1  ;;  %p40_p7 = scmp.eq.s32.totalorder %s37_s20, 0 }
   0xf   : > { %p778_p8 = por %p56_p5, %p55_p3  ;;  %p113_p10 = scmp.eq.s32.totalorder %s463_s16, 1 }
  0x10   : > { %p782_p9 = por %p107_p6, %p49_p1  ;;  %p465_p12 = scmp.ge.s32.totalorder %s711_s14, 2 }
  0x11   : > { %s787_s23 = scalar_select %p40_p7, %s699_s11, %s42_s18  }
  0x12   : > { %p789_p11 = por %p113_p10, %p55_p3  ;;  %p502_p13 = scmp.lt.s32.totalorder %s711_s14, 2 }
  0x13   : > { %s796_s25 = sand.u32 1, %s699_s11   ;;  %s477_s27 = sshll.u32 %s707_s13, 3 }
  0x14   : > { %s466_s26 = sshll.u32 %s796_s25, 3  ;;  %s143_s30 = scalar_lea.hbm %s895_s0, %s477_s27 }
  0x15   : > { %s137_s3 = scalar_lea.vmem [#allocation5], %s466_s26  ;;  %s144_s5 = sshll.u32 %s143_s30, 4  ;;  %s145_s5 = int_to_ptr.hbm [resolvable:$true] %s144_s5 }
  0x16   : > { %s146_s4 = sshll.u32 %s137_s3, 4  ;;  %p805_p0 = pnand %p502_p13, %p772_p4  ;;  %s147_s4 = int_to_ptr.vmem [resolvable:$true] %s146_s4 }
  0x17   : > { %p472_p1 = scmp.ge.s32.totalorder %s711_s14, 1  ;;  %s134_s7 = scalar_lea.sflag [#allocation6], %s796_s25 }
  0x18   : > { %s713_s8 = smov 32   ;;  %s714_s15 = smov 2  }
  0x19   : > { %494 = dma.hbm_to_vmem [thread:$0]  (!%p805_p0), %s145_s5, 128, %s147_s4, %s134_s7, %s713_s8, %s713_s8, %s714_s15  }
  0x1a   : > { %p177_p2 = scmp.lt.s32.totalorder %s711_s14, 3  ;;  %s166_s20 = scalar_lea.hbm %s896_s1, %s477_s27 }
  0x1b   : > { %s167_s28 = sshll.u32 %s166_s20, 4  ;;  %s160_s19 = scalar_lea.vmem [#allocation8], %s466_s26  ;;  %s168_s28 = int_to_ptr.hbm [resolvable:$true] %s167_s28 }
  0x1c   : > { %p178_p3 = pnand %p472_p1, %p177_p2  ;;  %s169_s29 = sshll.u32 %s160_s19, 4  ;;  %s170_s29 = int_to_ptr.vmem [resolvable:$true] %s169_s29 }
  0x1d   : > { %s157_s30 = scalar_lea.sflag [#allocation9], %s796_s25  ;;  %s821_s3 = sand.u32 (!%p178_p3), 1, %s695_s10  }
  0x1e   : > { %497 = dma.hbm_to_vmem [thread:$0]  (!%p805_p0), %s168_s28, 128, %s170_s29, %s157_s30, %s713_s8, %s713_s8, %s714_s15  }
  0x1f   : > { %181 = sbr.rel (%p178_p3) target bundleno = 286 (0x11e), region = 28  ;;  %s473_s4 = sshll.u32 (!%p178_p3), %s821_s3, 3 }
  0x20   : > { %s184_s5 = scalar_lea.sflag (!%p178_p3), [#allocation6], %s821_s3  ;;  %s187_s7 = scalar_lea.vmem (!%p178_p3), [#allocation5], %s473_s4 }
  0x24   : > { %678 = dma.done.wait (%p778_p8), %s184_s5, 128  }
  0x25   : > { %680 = vsyncadd (%p778_p8), %s184_s5, 4294967168  ;;  %s194_s25 = scalar_lea.sflag [#allocation9], %s821_s3  ;;  %s197_s26 = scalar_lea.vmem [#allocation8], %s473_s4 }
  0x26   : > { %682 = dma.done.wait (%p778_p8), %s194_s25, 128  }
  0x27   : > { %684 = vsyncadd (%p778_p8), %s194_s25, 4294967168  ;;  %v715_v0 = vmov 0.0   ;;  %vm238_vm0 = vcmask 1041408   ;;  %v230_v1 = vld [vmem:[%s187_s7] sm:$0x3]  ;;  %s357_s6 = scalar_lea.hbm %s897_s2, %s703_s12  ;;  %s222_s16 = scalar_lea.vmem [#allocation10], %s821_s3 }
  0x28   : > { %227 = vst [vmem:[#allocation2] sm:$0x3] %v715_v0  ;;  %v231_v2 = vld [vmem:[%s187_s7 + $0x2] sm:$0x3]  ;;  %v232_v3 = vld [vmem:[%s187_s7 + $0x4] sm:$0x3] }
  0x29   : > { %228 = vst [vmem:[#allocation3] sm:$0x3] %v715_v0  ;;  %v233_v4 = vld [vmem:[%s187_s7 + $0x6] sm:$0x3]  ;;  %v234_v5 = vld [vmem:[%s197_s26] sm:$0x3] }
  0x2a   : > { %229 = vst [vmem:[#allocation4] sm:$0x3] %v715_v0  ;;  %v235_v6 = vld [vmem:[%s197_s26 + $0x2] sm:$0x3]  ;;  %v236_v7 = vld [vmem:[%s197_s26 + $0x4] sm:$0x3]  ;;  %v268_v10 = vmul.f32 %v234_v5, %v230_v1  ;;  %v287_v20 = vadd.f32 %v234_v5, %v230_v1 }
  0x2b   : > { %v239_v8 = vsel %vm238_vm0, %v230_v1, -inf  ;;  %v240_v9 = vsel %vm238_vm0, %v231_v2, -inf  ;;  %v269_v11 = vmul.f32 %v235_v6, %v231_v2  ;;  %v241_v12 = vsel %vm238_vm0, %v232_v3, -inf  ;;  %v237_v16 = vld [vmem:[%s197_s26 + $0x6] sm:$0x3]  ;;  %s858_s18 = sshll.u32 %s222_s16, 4  ;;  %s360_s18 = int_to_ptr.vmem [resolvable:$true] %s858_s18 }
  0x2c   : > { %v242_v13 = vsel %vm238_vm0, %v233_v4, -inf  ;;  %v243_v14 = vmax.f32 %v239_v8, %v240_v9  ;;  %v270_v15 = vmul.f32 %v236_v7, %v232_v3  ;;  %v272_v18 = vsel %vm238_vm0, %v268_v10, 0.0  ;;  %s361_s28 = sshll.u32 %s357_s6, 4  ;;  %s349_s12 = scalar_lea.sflag [#allocation7], %s821_s3  ;;  %s362_s28 = int_to_ptr.hbm [resolvable:$true] %s361_s28 }
  0x2d   : > { %v244_v17 = vmax.f32 %v241_v12, %v242_v13  ;;  %v273_v19 = vsel %vm238_vm0, %v269_v11, 0.0  ;;  %v288_v21 = vadd.f32 %v235_v6, %v231_v2  ;;  %v289_v24 = vadd.f32 %v236_v7, %v232_v3  ;;  %s639_s19 = sshra.s32 %s362_s28, 4  ;;  %s645_s5 = scalar_lea.hbm %s897_s2, 2  ;;  %s640_s19 = int_to_ptr.hbm [resolvable:$true] %s639_s19 }
  0x2e   : > { %v274_v23 = vadd.f32 %v273_v19, %v272_v18  ;;  %v290_v25 = vadd.f32 %v237_v16, %v233_v4  ;;  %v271_v26 = vmul.f32 %v237_v16, %v233_v4  ;;  %v275_v27 = vsel %vm238_vm0, %v270_v15, 0.0  ;;  %s641_s29 = scalar_lea.hbm %s640_s19, 1  ;;  %p646_p7 = scmp.lt.s32.totalorder %s640_s19, %s897_s2 }
  0x2f   : > { %v245_v22 = vmax.f32 %v243_v14, %v244_v17  ;;  %v291_v28 = vsel %vm238_vm0, %v287_v20, 0.0  ;;  %v292_v29 = vsel %vm238_vm0, %v288_v21, 0.0  ;;  %v294_v35 = vsel %vm238_vm0, %v289_v24, 0.0  ;;  %p642_p4 = scmp.ne.s32.totalorder %s640_s19, %s641_s29  ;;  %p647_p8 = scmp.lt.s32.totalorder %s645_s5, %s641_s29 }
  0x30   : > { %v293_v34 = vadd.f32 %v292_v29, %v291_v28  ;;  %v296_v36 = vsel %vm238_vm0, %v290_v25, 0.0  ;;  %v276_v40 = vadd.f32 %v275_v27, %v274_v23  ;;  %v277_v42 = vsel %vm238_vm0, %v271_v26, 0.0  ;;  %v283_v48 = vld [vmem:[#allocation3] sm:$0x3] }
  0x31   : > { %v246_v30 = vsub.f32 %v230_v1, %v245_v22  ;;  %v247_v31 = vsub.f32 %v231_v2, %v245_v22  ;;  %v248_v32 = vsub.f32 %v232_v3, %v245_v22  ;;  %v249_v33 = vsub.f32 %v233_v4, %v245_v22  ;;  %v286_v44 = vld [vmem:[#allocation4] sm:$0x3]  ;;  %v279_v2 = vld [vmem:[#allocation2] sm:$0x3]  ;;  %p643_p5 = pnand %p642_p4, %p782_p9  ;;  %p648_p10 = por %p647_p8, %p646_p7 }
  0x32   : > { %v295_v43 = vadd.f32 %v294_v35, %v293_v34  ;;  %v278_v46 = vadd.f32 %v277_v42, %v276_v40 }
  0x33   : > { %v250_v37 = vmul.f32 1.442695, %v246_v30  ;;  %v252_v38 = vmul.f32 1.442695, %v247_v31  ;;  %v254_v39 = vmul.f32 1.442695, %v248_v32  ;;  %v336_v30 = vlaneseq  ;;  %p644_p6 = pneg %p643_p5 }
  0x34   : > { %v256_v41 = vmul.f32 1.442695, %v249_v33  ;;  %v297_v45 = vadd.f32 %v296_v36, %v295_v43  ;;  %v284_v49 = vadd.f32 %v283_v48, %v278_v46 }
  0x35   : > { %555 = vpow2.f32 %v250_v37  ;;  %v337_v31 = vand.u32 127, %v336_v30  ;;  %p649_p13 = pnand %p648_p10, %p644_p6 }
  0x36   : > { %557 = vpow2.f32 %v252_v38  ;;  %v298_v47 = vadd.f32 %v297_v45, %v286_v44  ;;  %285 = vst [vmem:[#allocation3] sm:$0x3] %v284_v49 }
  0x37   : > { %559 = vpow2.f32 %v254_v39  ;;  %vm340_vm1 = vcmp.eq.s32.totalorder %v337_v31, 2  ;;  %vm339_vm2 = vcmp.eq.s32.totalorder %v337_v31, 1  ;;  %vm338_vm3 = vcmp.eq.s32.totalorder %v337_v31, 0 }
  0x38   : > { %561 = vpow2.f32 %v256_v41  ;;  %299 = vst [vmem:[#allocation4] sm:$0x3] %v298_v47 }
  0x3b   : > { %v556_v50 = vpop.eup %555 }
  0x3c   : > { %v558_v51 = vpop.eup %557  ;;  %v258_v52 = vsel %vm238_vm0, %v556_v50, 0.0 }
  0x3d   : > { %v560_v53 = vpop.eup %559  ;;  %v259_v54 = vsel %vm238_vm0, %v558_v51, 0.0  ;;  %v314_v7 = vld [vmem:[#allocation3] sm:$0x3] }
  0x3e   : > { %v562_v55 = vpop.eup %561  ;;  %v260_v56 = vadd.f32 %v259_v54, %v258_v52  ;;  %v261_v57 = vsel %vm238_vm0, %v560_v53, 0.0  ;;  %v315_v8 = vsel %vm238_vm0, %v314_v7, 0.0 }
  0x3f   : > { %v263_v58 = vsel %vm238_vm0, %v562_v55, 0.0  ;;  %v325_v60 = vld [vmem:[#allocation4] sm:$0x3] }
  0x40   : > { %v262_v59 = vadd.f32 %v261_v57, %v260_v56  ;;  %v326_v62 = vsel %vm238_vm0, %v325_v60, 0.0 }
  0x41   : > { %327 = vadd.xlane.f32.xlu1 %v326_v62 }
  0x42   : > { %v264_v61 = vadd.f32 %v263_v58, %v262_v59 }
  0x44   : > { %563 = vlog2.f32 %v264_v61 }
  0x4a   : > { %v564_v63 = vpop.eup %563 }
  0x4b   : > { %v266_v0 = vmul.f32 0.6931472, %v564_v63 }
  0x4d   : > { %v267_v1 = vadd.f32 %v266_v0, %v245_v22 }
  0x4f   : > { %v280_v3 = vsub.f32 %v267_v1, %v278_v46 }
  0x51   : > { %v281_v4 = vadd.f32 %v280_v3, %v279_v2 }
  0x53   : > { %282 = vst [vmem:[#allocation2] sm:$0x3] %v281_v4 }
  0x5a   : > { %v303_v5 = vld [vmem:[#allocation2] sm:$0x3] }
  0x5b   : > { %v304_v6 = vsel %vm238_vm0, %v303_v5, 0.0 }
  0x5c   : > { %305 = vadd.xlane.f32.xlu0 %v304_v6 }
  0x64   : > { %316 = vadd.xlane.f32.xlu0 %v315_v8 }
  0xb4   : > { %v328_v9 = vpop.xlane.xlu1 %327 }
  0xb5   : > { %v329_v11 = vrot.slane %v328_v9, 4 }
  0xb7   : > { %v330_v14 = vadd.f32 %v329_v11, %v328_v9 }
  0xb9   : > { %v331_v17 = vrot.slane %v330_v14, 2 }
  0xbb   : > { %v332_v23 = vadd.f32 %v331_v17, %v330_v14 }
  0xbd   : > { %v333_v26 = vrot.slane %v332_v23, 1 }
  0xbf   : > { %v334_v29 = vadd.f32 %v333_v26, %v332_v23 }
  0xcf   : > { %v306_v10 = vpop.xlane.xlu0 %305 }
  0xd0   : > { %v307_v12 = vrot.slane %v306_v10, 4 }
  0xd2   : > { %v308_v13 = vadd.f32 %v307_v12, %v306_v10 }
  0xd4   : > { %v309_v15 = vrot.slane %v308_v13, 2 }
  0xd6   : > { %v310_v16 = vadd.f32 %v309_v15, %v308_v13 }
  0xd7   : > { %v317_v18 = vpop.xlane.xlu0 %316 }
  0xd8   : > { %v318_v19 = vrot.slane %v317_v18, 4  ;;  %v311_v20 = vrot.slane %v310_v16, 1 }
  0xda   : > { %v319_v21 = vadd.f32 %v318_v19, %v317_v18  ;;  %v312_v22 = vadd.f32 %v311_v20, %v310_v16 }
  0xdc   : > { %v320_v24 = vrot.slane %v319_v21, 2  ;;  %479 = vpush %v312_v22 }
  0xde   : > { %v321_v25 = vadd.f32 %v320_v24, %v319_v21 }
  0xe0   : > { %v322_v27 = vrot.slane %v321_v25, 1 }
  0xe2   : > { %v323_v28 = vadd.f32 %v322_v27, %v321_v25 }
  0xe4   : > { %481 = vpush %v323_v28 }
  0xe5   : > { %483 = vpush %v334_v29 }
 0x10d   : > { %s480_s8 = spop %479 }
 0x10e   : > { %v345_v35 = vstv %s480_s8 }
 0x115   : > { %s482_s15 = spop %481 }
 0x116   : > { %v343_v32 = vstv %s482_s15  ;;  %s484_s20 = spop %483 }
 0x117   : > { %v341_v33 = vstv %s484_s20 }
 0x118   : > { %v342_v34 = vsel %vm340_vm1, %v341_v33, 0.0 }
 0x119   : > { %v344_v36 = vsel %vm339_vm2, %v343_v32, %v342_v34 }
 0x11a   : > { %v346_v37 = vsel %vm338_vm3, %v345_v35, %v344_v36 }
 0x11b   : > { %347 = vst [vmem:[%s222_s16] sm:$0x1] %v346_v37 }
 0x11c   : > { %652 = shalt.err (!%p649_p13)
}
 0x11d   : > { %489 = dma.vmem_to_hbm [thread:$0]  (%p782_p9), %s360_s18, 16, %s362_s28, %s349_s12  }
 0x11e PF: > { %s373_s3 = sand.u32 1, %s691_s9   ;;  %p499_p0 = pnand %p465_p12, %p789_p11 }
 0x11f   : > { %s374_s26 = scalar_lea.sflag [#allocation7], %s373_s3 }
 0x120   : > { %p500_p1 = pneg %p499_p0 }
 0x122   : > { %686 = dma.done.wait (%p500_p1), %s374_s26, 16  }
 0x123   : > { %688 = vsyncadd (%p500_p1), %s374_s26, 4294967280  ;;  %s21_s14 = sadd.s32 1, %s711_s14   ;;  %s903_s9 = smov %s695_s10 }
 0x124   : > { %p18_p2 = scmp.ge.s32.totalorder %s21_s14, 4   ;;  %s904_s10 = smov %s699_s11 }
 0x125   : > { %s905_s11 = smov %s787_s23  ;;  %s906_s12 = smov %s707_s13 }
 0x126   : > { %s907_s13 = smov %s909_s17  ;;  %20 = sbr.rel (!%p18_p2) target bundleno = 8 (0x8), region = 94 }
 0x12b   :  { %379 = vsyncpa [#allocation6], 1 }
 0x12c   :  { %381 = vsyncpa [#allocation6 + $0x1], 1 }
 0x12d   :  { %382 = vsyncpa [#allocation9], 1 }
 0x12e   :  { %384 = vsyncpa [#allocation9 + $0x1], 1 }
 0x12f   :  { %385 = vsyncpa [#allocation7], 1 }
 0x130   :  { %387 = vsyncpa [#allocation7 + $0x1], 1 }

</bundles_post_ra>
